<compile_context>
chip_gen: v6e
topology: v6e:2x2x1
jax: 0.10.0
libtpu: 0.0.40
codegen_flags: <defaults>
</compile_context>

<pallas_src>
import functools

import jax
import jax.numpy as jnp
from jax.experimental import pallas as pl
from jax.experimental.pallas import tpu as pltpu


def _cdiv(a, b):
    return -(-a // b)


def _num_core_splits():
    """2 on multi-TensorCore chips (v4/v5p/v7x), 1 on single-TC v5e/v6e."""
    try:
        kind = jax.devices()[0].device_kind.lower()
    except Exception:
        return 2  # safe fallback: correct everywhere, helps on multi-TC chips
    single_tc_tags = ("v2", "v3", "v5e", "v5 lite", "v6e", "v6 lite", "lite")
    return 1 if any(t in kind for t in single_tc_tags) else 2


def _tv_kernel(x_ref, acc_h_ref, acc_w_ref, *, w, hw_pad):
    @pl.when(pl.program_id(1) == 0)
    def _init():
        acc_h_ref[...] = jnp.zeros_like(acc_h_ref)
        acc_w_ref[...] = jnp.zeros_like(acc_w_ref)

    x = x_ref[...]                                    # (bc_tile, hw_pad)

    # Neighbour maps at full lane width via XLU lane rotation (jnp.roll
    # semantics, positive shift):  x_v[:, p] == x[:, (p + w) % hw_pad] and
    # x_h[:, p] == x[:, (p + 1) % hw_pad].  Wrap / pad positions are masked
    # out per-lane in the epilogue (the mask depends only on the lane index).
    x_v = pltpu.roll(x, shift=hw_pad - w, axis=1)     # vertical neighbour
    x_h = pltpu.roll(x, shift=hw_pad - 1, axis=1)     # horizontal neighbour
    dh = (x_v - x).astype(jnp.float32)
    dw = (x_h - x).astype(jnp.float32)

    # Sublane-dense accumulation: sum groups of 8 rows with whole-vreg adds
    # into a resident (1, 8, hw_pad) f32 accumulator (no masked stores, no
    # per-step cross-sublane XLU reduce).
    bc_tile = x.shape[0]
    dh2 = (dh * dh).reshape(bc_tile // 8, 8, hw_pad)
    dw2 = (dw * dw).reshape(bc_tile // 8, 8, hw_pad)
    acc_h_ref[...] += jnp.sum(dh2, axis=0)[None]
    acc_w_ref[...] += jnp.sum(dw2, axis=0)[None]


def tv_loss(x, tv_loss_weight=1.0):
    b, c, h, w = x.shape
    n = b * c
    hw = h * w
    dtype_bytes = jnp.dtype(x.dtype).itemsize

    # Lane-dense view: one flattened image per row, padded to a lane multiple.
    hw_pad = _cdiv(hw, 128) * 128
    x2d = x.reshape(n, hw)

    num_core_splits = _num_core_splits()

    # dtype-aware sublane multiple (f32: 8, bf16: 16, int8/fp8: 32).
    sub = max(8, 32 // dtype_bytes)

    # Block sizing against a conservative universal VMEM budget:
    #   double-buffered input block + f32 diff/square temporaries + resident
    #   accumulators, kept under ~24 MiB so it fits every generation.
    acc_bytes = 2 * num_core_splits * 2 * 8 * hw_pad * 4   # 2 accs, 2x safety
    per_row_bytes = hw_pad * (2 * dtype_bytes + 3 * 4)
    budget = 24 * 1024 * 1024
    block_budget = max(budget - acc_bytes, per_row_bytes * sub)
    per_core = _cdiv(n, num_core_splits)
    bc_tile = max(sub, min(block_budget // per_row_bytes, per_core))
    bc_tile = _cdiv(bc_tile, sub) * sub
    steps_per_core = _cdiv(per_core, bc_tile)
    n_pad = num_core_splits * steps_per_core * bc_tile

    if n_pad != n or hw_pad != hw:
        # Zero rows / zero pad columns contribute zero (or are masked below).
        x2d = jnp.pad(x2d, ((0, n_pad - n), (0, hw_pad - hw)))

    working_set = (2 * bc_tile * hw_pad * dtype_bytes     # double-buffered in
                   + 3 * bc_tile * hw_pad * 4             # f32 temporaries
                   + acc_bytes)
    vmem_limit = int(max(32 * 1024 * 1024,
                         min(working_set * 5 // 4, 120 * 1024 * 1024)))

    acc_h, acc_w = pl.pallas_call(
        functools.partial(_tv_kernel, w=w, hw_pad=hw_pad),
        out_shape=(
            jax.ShapeDtypeStruct((num_core_splits, 8, hw_pad), jnp.float32),
            jax.ShapeDtypeStruct((num_core_splits, 8, hw_pad), jnp.float32),
        ),
        grid_spec=pltpu.PrefetchScalarGridSpec(
            num_scalar_prefetch=0,
            grid=(num_core_splits, steps_per_core),
            in_specs=[
                pl.BlockSpec((bc_tile, hw_pad),
                             lambda p, i: (p * steps_per_core + i, 0)),
            ],
            out_specs=[
                pl.BlockSpec((1, 8, hw_pad), lambda p, i: (p, 0, 0)),
                pl.BlockSpec((1, 8, hw_pad), lambda p, i: (p, 0, 0)),
            ],
        ),
        compiler_params=pltpu.CompilerParams(
            dimension_semantics=("parallel", "arbitrary"),
            vmem_limit_bytes=vmem_limit,
        ),
        cost_estimate=pl.CostEstimate(
            flops=8 * n * hw,
            transcendentals=0,
            bytes_accessed=n_pad * hw_pad * dtype_bytes
                           + 2 * num_core_splits * 8 * hw_pad * 4,
        ),
    )(x2d)

    # Tiny JAX epilogue: per-lane validity masks + final scalar reduce.
    pos = jnp.arange(hw_pad)
    mask_h = (pos < (hw - w)).astype(jnp.float32)              # (h-1)*w valid
    mask_w = ((pos < hw) & (pos % w != (w - 1))).astype(jnp.float32)  # h*(w-1)
    h_tv = jnp.sum(jnp.sum(acc_h, axis=(0, 1)) * mask_h)
    w_tv = jnp.sum(jnp.sum(acc_w, axis=(0, 1)) * mask_w)

    count_h = c * (h - 1) * w      # tensor_size(x[:, :, 1:, :])
    count_w = c * h * (w - 1)      # tensor_size(x[:, :, :, 1:])
    return tv_loss_weight * 2.0 * (h_tv / count_h + w_tv / count_w) / b


def tv_loss_ref(x, tv_loss_weight=1.0):
    b, c, h, w = x.shape
    count_h = c * (h - 1) * w
    count_w = c * h * (w - 1)
    h_tv = jnp.sum((x[:, :, 1:, :] - x[:, :, : h - 1, :]) ** 2)
    w_tv = jnp.sum((x[:, :, :, 1:] - x[:, :, :, : w - 1]) ** 2)
    return tv_loss_weight * 2.0 * (h_tv / count_h + w_tv / count_w) / b


if __name__ == "__main__":
    key = jax.random.PRNGKey(0)

    # Main test shape (matches the module's typical NCHW input).
    x = jax.random.normal(key, (2, 4, 16, 16), dtype=jnp.float32)
    out = jax.block_until_ready(tv_loss(x, tv_loss_weight=1.0))
    ref = jax.block_until_ready(tv_loss_ref(x, tv_loss_weight=1.0))
    assert jnp.allclose(out, ref, rtol=1e-5, atol=1e-5), (out, ref)

    # Odd shape: exercises the h*w -> multiple-of-128 lane padding + masks.
    x2 = jax.random.normal(jax.random.PRNGKey(1), (2, 3, 12, 20),
                           dtype=jnp.float32)
    out2 = jax.block_until_ready(tv_loss(x2, tv_loss_weight=0.5))
    ref2 = jax.block_until_ready(tv_loss_ref(x2, tv_loss_weight=0.5))
    assert jnp.allclose(out2, ref2, rtol=1e-5, atol=1e-5), (out2, ref2)

    print("KERNEL_OK")
</pallas_src>

<mosaic_0001>
module attributes {stable_mosaic.version = 11 : i64} {
  func.func @_tv_kernel(%arg0: i32, %arg1: i32, %arg2: memref<8x256xf32, #tpu.memory_space<vmem>>, %arg3: memref<1x8x256xf32, #tpu.memory_space<vmem>>, %arg4: memref<1x8x256xf32, #tpu.memory_space<vmem>>) attributes {dimension_semantics = [#tpu.dimension_semantics<parallel>, #tpu.dimension_semantics<arbitrary>], iteration_bounds = array<i64: 2, 1>, scalar_prefetch = 0 : i64, scratch_operands = 0 : i64, tpu.core_type = #tpu.core_type<tc>, window_params = [{transform_indices = @transform_0, window_bounds = array<i64: 8, 256>}, {transform_indices = @transform_1, window_bounds = array<i64: 1, 8, 256>}, {transform_indices = @transform_2, window_bounds = array<i64: 1, 8, 256>}]} {
    %c0_i32 = arith.constant 0 : i32
    %0 = arith.cmpi eq, %arg1, %c0_i32 : i32
    %1 = arith.extui %0 : i1 to i32
    %c0_i32_0 = arith.constant 0 : i32
    %2 = arith.cmpi ne, %1, %c0_i32_0 : i32
    scf.if %2 {
      %cst_15 = arith.constant 0.000000e+00 : f32
      %22 = vector.broadcast %cst_15 : f32 to vector<1x8x256xf32>
      %c0_16 = arith.constant 0 : index
      %c0_17 = arith.constant 0 : index
      %c0_18 = arith.constant 0 : index
      %23 = vector.load %arg3[%c0_16, %c0_17, %c0_18] : memref<1x8x256xf32, #tpu.memory_space<vmem>>, vector<1x8x256xf32>
      tpu.vector_store %arg3[%c0_16, %c0_17, %c0_18], %22 {strides = array<i32>} : memref<1x8x256xf32, #tpu.memory_space<vmem>>, vector<1x8x256xf32>,
      %cst_19 = arith.constant 0.000000e+00 : f32
      %24 = vector.broadcast %cst_19 : f32 to vector<1x8x256xf32>
      %c0_20 = arith.constant 0 : index
      %c0_21 = arith.constant 0 : index
      %c0_22 = arith.constant 0 : index
      %25 = vector.load %arg4[%c0_20, %c0_21, %c0_22] : memref<1x8x256xf32, #tpu.memory_space<vmem>>, vector<1x8x256xf32>
      tpu.vector_store %arg4[%c0_20, %c0_21, %c0_22], %24 {strides = array<i32>} : memref<1x8x256xf32, #tpu.memory_space<vmem>>, vector<1x8x256xf32>,
    } else {
    }
    %c0 = arith.constant 0 : index
    %c0_1 = arith.constant 0 : index
    %3 = vector.load %arg2[%c0, %c0_1] : memref<8x256xf32, #tpu.memory_space<vmem>>, vector<8x256xf32>
    %c240_i32 = arith.constant 240 : i32
    %4 = tpu.dynamic_rotate %3 by %c240_i32 dim 1 : vector<8x256xf32>, i32 -> vector<8x256xf32>
    %c255_i32 = arith.constant 255 : i32
    %5 = tpu.dynamic_rotate %3 by %c255_i32 dim 1 : vector<8x256xf32>, i32 -> vector<8x256xf32>
    %6 = arith.subf %4, %3 : vector<8x256xf32>
    %7 = arith.subf %5, %3 : vector<8x256xf32>
    %8 = arith.mulf %6, %6 : vector<8x256xf32>
    %9 = vector.shape_cast %8 : vector<8x256xf32> to vector<1x8x256xf32>
    %10 = arith.mulf %7, %7 : vector<8x256xf32>
    %11 = vector.shape_cast %10 : vector<8x256xf32> to vector<1x8x256xf32>
    %c0_2 = arith.constant 0 : index
    %c0_3 = arith.constant 0 : index
    %c0_4 = arith.constant 0 : index
    %12 = vector.load %arg3[%c0_2, %c0_3, %c0_4] : memref<1x8x256xf32, #tpu.memory_space<vmem>>, vector<1x8x256xf32>
    %cst = arith.constant dense<0.000000e+00> : vector<8x256xf32>
    %13 = vector.multi_reduction <add>, %9, %cst [0] : vector<1x8x256xf32> to vector<8x256xf32>
    %14 = vector.shape_cast %13 : vector<8x256xf32> to vector<1x8x256xf32>
    %15 = arith.addf %12, %14 : vector<1x8x256xf32>
    %c0_5 = arith.constant 0 : index
    %c0_6 = arith.constant 0 : index
    %c0_7 = arith.constant 0 : index
    %16 = vector.load %arg3[%c0_5, %c0_6, %c0_7] : memref<1x8x256xf32, #tpu.memory_space<vmem>>, vector<1x8x256xf32>
    tpu.vector_store %arg3[%c0_5, %c0_6, %c0_7], %15 {strides = array<i32>} : memref<1x8x256xf32, #tpu.memory_space<vmem>>, vector<1x8x256xf32>,
    %c0_8 = arith.constant 0 : index
    %c0_9 = arith.constant 0 : index
    %c0_10 = arith.constant 0 : index
    %17 = vector.load %arg4[%c0_8, %c0_9, %c0_10] : memref<1x8x256xf32, #tpu.memory_space<vmem>>, vector<1x8x256xf32>
    %cst_11 = arith.constant dense<0.000000e+00> : vector<8x256xf32>
    %18 = vector.multi_reduction <add>, %11, %cst_11 [0] : vector<1x8x256xf32> to vector<8x256xf32>
    %19 = vector.shape_cast %18 : vector<8x256xf32> to vector<1x8x256xf32>
    %20 = arith.addf %17, %19 : vector<1x8x256xf32>
    %c0_12 = arith.constant 0 : index
    %c0_13 = arith.constant 0 : index
    %c0_14 = arith.constant 0 : index
    %21 = vector.load %arg4[%c0_12, %c0_13, %c0_14] : memref<1x8x256xf32, #tpu.memory_space<vmem>>, vector<1x8x256xf32>
    tpu.vector_store %arg4[%c0_12, %c0_13, %c0_14], %20 {strides = array<i32>} : memref<1x8x256xf32, #tpu.memory_space<vmem>>, vector<1x8x256xf32>,
    return
  }
  func.func @transform_0(%arg0: i32, %arg1: i32) -> (i32, i32) {
    %c1_i32 = arith.constant 1 : i32
    %0 = arith.muli %arg0, %c1_i32 : i32
    %1 = arith.addi %0, %arg1 : i32
    %c0_i32 = arith.constant 0 : i32
    %c0_i32_0 = arith.constant 0 : i32
    return %1, %c0_i32 : i32, i32
  }
  func.func @transform_1(%arg0: i32, %arg1: i32) -> (i32, i32, i32) {
    %c0_i32 = arith.constant 0 : i32
    %c0_i32_0 = arith.constant 0 : i32
    %c0_i32_1 = arith.constant 0 : i32
    return %arg0, %c0_i32, %c0_i32_0 : i32, i32, i32
  }
  func.func @transform_2(%arg0: i32, %arg1: i32) -> (i32, i32, i32) {
    %c0_i32 = arith.constant 0 : i32
    %c0_i32_0 = arith.constant 0 : i32
    %c0_i32_1 = arith.constant 0 : i32
    return %arg0, %c0_i32, %c0_i32_0 : i32, i32, i32
  }
}

</mosaic_0001>

<bundles_post_ra>
// kernel: tpu_custom_call.1
= control target key start
LH: loop header
LB: loop body
LE: loop exit
PB: predicated region body
PF: predicated region fallthrough
CT: control target
= control target key end

     0   :  { %8 = vsyncpa [#allocation3], 0  ;;  %s813_s0 = inlined_call_operand.hbm [shape: f32[16,256], index: 0, kind: input, shape index: {}]   ;;  %s814_s1 = inlined_call_operand.hbm [shape: f32[2,8,256], index: 1, kind: output, shape index: {0}]   ;;  %s815_s2 = inlined_call_operand.hbm [shape: f32[2,8,256], index: 2, kind: output, shape index: {1}]  }
   0x1   :  { %10 = vsyncpa [#allocation3 + $0x1], 0 }
   0x2   :  { %11 = vsyncpa [#allocation4], 0 }
   0x3   :  { %13 = vsyncpa [#allocation4 + $0x1], 0 }
   0x4   :  { %14 = vsyncpa [#allocation7], 0 }
   0x5   :  { %16 = vsyncpa [#allocation7 + $0x1], 0  ;;  %s634_s9 = smov 0   ;;  %s636_s10 = smov 0  }
   0x6   :  { %s638_s11 = smov 0   ;;  %s640_s12 = smov 0  }
   0x7   :  { %s642_s13 = smov 0   ;;  %s644_s14 = smov 0  }
   0x8 LB: > { %s382_s15 = sadd.s32 4294967295, %s612_s14   ;;  %s383_s16 = sadd.s32 4294967294, %s612_s14   ;;  %s612_s14 = sphi %s644_s14, %s22_s14   ;;  %s608_s13 = sphi %s642_s13, %s827_s13   ;;  %s604_s12 = sphi %s640_s12, %s826_s12   ;;  %s600_s11 = sphi %s638_s11, %s825_s11   ;;  %s596_s10 = sphi %s636_s10, %s824_s10   ;;  %s592_s9 = sphi %s634_s9, %s823_s9  }
   0x9   : > { %s34_s17 = sadd.s32 1, %s608_s13  ;;  %s43_s18 = sadd.s32 1, %s600_s11 }
   0xa   : > { %p36_p0 = scmp.ge.s32.totalorder %s34_s17, 2  ;;  %p50_p1 = scmp.ne.s32.totalorder %s600_s11, %s596_s10 }
   0xb   : > { %p51_p2 = scmp.eq.s32.totalorder %s612_s14, 0  ;;  %p56_p3 = scmp.ne.s32.totalorder %s596_s10, %s592_s9 }
   0xc   : > { %s829_s17 = smov (%p36_p0, %s34_s17), 0  ;;  %p57_p5 = scmp.eq.s32.totalorder %s382_s15, 0 }
   0xd   : > { %p675_p4 = por %p51_p2, %p50_p1  ;;  %s40_s20 = ssub.s32 %s608_s13, %s829_s17 }
   0xe   : > { %p80_p6 = scmp.eq.s32.totalorder %s382_s15, 1  ;;  %p41_p7 = scmp.eq.s32.totalorder %s40_s20, 0 }
   0xf   : > { %p681_p8 = por %p57_p5, %p56_p3  ;;  %p86_p10 = scmp.eq.s32.totalorder %s383_s16, 1 }
  0x10   : > { %p685_p9 = por %p80_p6, %p50_p1  ;;  %p421_p13 = scmp.lt.s32.totalorder %s612_s14, 2 }
  0x11   : > { %s690_s23 = scalar_select %p41_p7, %s600_s11, %s43_s18  }
  0x12   : > { %p692_p11 = por %p86_p10, %p56_p3  ;;  %s132_s25 = sand.u32 1, %s600_s11  }
  0x13   : > { %s386_s26 = sshll.u32 %s132_s25, 4  ;;  %s401_s27 = sshll.u32 %s608_s13, 8 }
  0x14   : > { %s819_s24 = scalar_select %p692_p11, 1, 0 }
  0x15   : > { %s143_s30 = scalar_lea.hbm %s813_s0, %s401_s27  ;;  %s136_s3 = scalar_lea.vmem [#allocation2], %s386_s26 }
  0x16   : > { %s145_s4 = sshll.u32 %s136_s3, 4  ;;  %p705_p0 = pnand %p421_p13, %p675_p4  ;;  %s146_s4 = int_to_ptr.vmem [resolvable:$true] %s145_s4 }
  0x17   : > { %p389_p1 = scmp.ge.s32.totalorder %s612_s14, 1  ;;  %p150_p2 = scmp.lt.s32.totalorder %s612_s14, 3 }
  0x18   : > { %s133_s6 = scalar_lea.sflag [#allocation3], %s132_s25  ;;  %p476_p3 = pneg %p705_p0 }
  0x19   : > { %s487_s7 = scalar_lea.vmem %s146_s4, 256  ;;  %s614_s8 = smov [#allocation2]  }
  0x1a   : > { %p488_p5 = scmp.ne.s32.totalorder %s146_s4, %s487_s7  ;;  %s492_s15 = sshll.u32 %s614_s8, 4  ;;  %s493_s15 = int_to_ptr.vmem [resolvable:$false] %s492_s15 }
  0x1b   : > { %s494_s16 = scalar_lea.vmem %s493_s15, 512  ;;  %p495_p10 = scmp.lt.s32.totalorder %s146_s4, %s493_s15 }
  0x1c   : > { %p490_p6 = pnand %p488_p5, %p476_p3  ;;  %p496_p12 = scmp.lt.s32.totalorder %s494_s16, %s487_s7 }
  0x1e   : > { %p491_p7 = pneg %p490_p6  ;;  %p497_p4 = por %p496_p12, %p495_p10 }
  0x20   : > { %p498_p13 = pnand %p497_p4, %p491_p7 }
  0x22   : > { %501 = shalt.err (!%p498_p13)
}
  0x23   : > { %413 = dma.hbm_to_vmem [thread:$0]  (!%p705_p0), %s143_s30, 256, %s146_s4, %s133_s6  }
  0x24   : > { %p151_p11 = pnand %p389_p1, %p150_p2 }
  0x25   : > { %s720_s18 = sand.u32 (!%p151_p11), 1, %s596_s10  }
  0x26   : > { %154 = sbr.rel (%p151_p11) target bundleno = 205 (0xcd), region = 24  ;;  %s723_s19 = sshll.u32 (!%p151_p11), %s720_s18, 4 }
  0x27   : > { %s157_s20 = scalar_lea.sflag (!%p151_p11), [#allocation3], %s720_s18  ;;  %s160_s25 = scalar_lea.vmem (!%p151_p11), [#allocation2], %s723_s19 }
  0x2b   : > { %579 = dma.done.wait (%p681_p8), %s157_s20, 256  }
  0x2c   : > { %581 = vsyncadd (%p681_p8), %s157_s20, 4294967040  ;;  %v195_v0 = vld [vmem:[%s160_s25] sm:$0xff]  ;;  %s615_s26 = smov 127   ;;  %s616_s27 = smov 112   ;;  %v196_v1 = vld [vmem:[%s160_s25 + $0x8] sm:$0xff]  ;;  %v201_v2 = vlaneseq }
  0x2d   : > { %206 = vrot.lane.b32.xlu1 %v195_v0, %s615_s26  ;;  %197 = vrot.lane.b32.xlu0 %v195_v0, %s616_s27  ;;  %s402_s21 = sshll.u32 %s604_s12, 8  ;;  %s178_s28 = scalar_lea.vmem [#allocation5], %s723_s19 }
  0x2e   : > { %v202_v3 = vand.u32 127, %v201_v2  ;;  %s257_s29 = sshll.u32 %s178_s28, 4  ;;  %s185_s30 = scalar_lea.vmem [#allocation6], %s723_s19  ;;  %s739_s29 = int_to_ptr.vmem [resolvable:$true] %s257_s29 }
  0x2f   : > { %s271_s3 = sshll.u32 %s185_s30, 4  ;;  %s737_s6 = scalar_lea.hbm %s814_s1, %s402_s21  ;;  %s746_s3 = int_to_ptr.vmem [resolvable:$true] %s271_s3 }
  0x30   : > { %vm210_vm0 = vcmp.lt.s32.totalorder %v202_v3, 127  ;;  %vm203_vm1 = vcmp.lt.s32.totalorder %v202_v3, 112  ;;  %s744_s12 = scalar_lea.hbm %s815_s2, %s402_s21  ;;  %s238_s15 = scalar_lea.sflag [#allocation4], %s720_s18 }
  0x31   : > { %208 = vrot.lane.b32.xlu1 %v196_v1, %s615_s26  ;;  %199 = vrot.lane.b32.xlu0 %v196_v1, %s616_s27  ;;  %s502_s16 = scalar_lea.vmem %s739_s29, 256  ;;  %s617_s19 = smov [#allocation5]  }
  0x32   : > { %p503_p8 = scmp.ne.s32.totalorder %s739_s29, %s502_s16  ;;  %s506_s20 = sshll.u32 %s617_s19, 4  ;;  %s507_s20 = int_to_ptr.vmem [resolvable:$false] %s506_s20 }
  0x33   : > { %s508_s25 = scalar_lea.vmem %s507_s20, 512  ;;  %p509_p0 = scmp.lt.s32.totalorder %s739_s29, %s507_s20 }
  0x34   : > { %p504_p11 = pnand %p503_p8, %p685_p9  ;;  %p510_p1 = scmp.lt.s32.totalorder %s508_s25, %s502_s16 }
  0x36   : > { %p505_p12 = pneg %p504_p11  ;;  %p511_p2 = por %p510_p1, %p509_p0 }
  0x38   : > { %p512_p3 = pnand %p511_p2, %p505_p12 }
  0x9f   : > { %v207_v4 = vpop.permute.xlu1 %206  ;;  %v198_v5 = vpop.permute.xlu0 %197 }
  0xa3   : > { %v209_v6 = vpop.permute.xlu1 %208  ;;  %v200_v7 = vpop.permute.xlu0 %199 }
  0xa4   : > { %v211_v8 = vsel %vm210_vm0, %v207_v4, %v209_v6  ;;  %v212_v9 = vsel %vm210_vm0, %v209_v6, %v207_v4  ;;  %v204_v10 = vsel %vm203_vm1, %v198_v5, %v200_v7  ;;  %v205_v11 = vsel %vm203_vm1, %v200_v7, %v198_v5 }
  0xa5   : > { %v215_v12 = vsub.f32 %v211_v8, %v195_v0  ;;  %v216_v13 = vsub.f32 %v212_v9, %v196_v1  ;;  %v213_v14 = vsub.f32 %v204_v10, %v195_v0  ;;  %v214_v15 = vsub.f32 %v205_v11, %v196_v1 }
  0xa7   : > { %v219_v16 = vmul.f32 %v215_v12, %v215_v12  ;;  %v220_v17 = vmul.f32 %v216_v13, %v216_v13  ;;  %v217_v18 = vmul.f32 %v213_v14, %v213_v14  ;;  %v218_v19 = vmul.f32 %v214_v15, %v214_v15 }
  0xa9   : > { %235 = vst [vmem:[%s185_s30] sm:$0xff] %v219_v16  ;;  %236 = vst [vmem:[%s185_s30 + $0x8] sm:$0xff] %v220_v17 }
  0xaa   : > { %227 = vst [vmem:[%s178_s28] sm:$0xff] %v217_v18  ;;  %228 = vst [vmem:[%s178_s28 + $0x8] sm:$0xff] %v218_v19 }
  0xab   : > { %515 = shalt.err (!%p512_p3)
}
  0xac   : > { %s516_s26 = scalar_lea.hbm %s737_s6, 256  ;;  %s520_s28 = scalar_lea.hbm %s814_s1, 512 }
  0xad   : > { %p517_p5 = scmp.ne.s32.totalorder %s737_s6, %s516_s26  ;;  %p521_p10 = scmp.lt.s32.totalorder %s737_s6, %s814_s1 }
  0xae   : > { %p522_p4 = scmp.lt.s32.totalorder %s520_s28, %s516_s26 }
  0xaf   : > { %p518_p6 = pnand %p517_p5, %p685_p9 }
  0xb0   : > { %p523_p13 = por %p522_p4, %p521_p10 }
  0xb1   : > { %p519_p7 = pneg %p518_p6 }
  0xb3   : > { %p524_p8 = pnand %p523_p13, %p519_p7 }
  0xb5   : > { %527 = shalt.err (!%p524_p8)
}
  0xb6   : > { %406 = dma.vmem_to_hbm [thread:$0]  (%p685_p9), %s739_s29, 256, %s737_s6, %s238_s15  }
  0xb7   : > { %s243_s5 = scalar_lea.sflag [#allocation7], %s720_s18  ;;  %s528_s7 = scalar_lea.vmem %s746_s3, 256 }
  0xb8   : > { %p529_p11 = scmp.ne.s32.totalorder %s746_s3, %s528_s7  ;;  %s618_s8 = smov [#allocation6]  }
  0xb9   : > { %s532_s16 = sshll.u32 %s618_s8, 4  ;;  %s533_s16 = int_to_ptr.vmem [resolvable:$false] %s532_s16 }
  0xba   : > { %p530_p12 = pnand %p529_p11, %p685_p9  ;;  %s534_s19 = scalar_lea.vmem %s533_s16, 512 }
  0xbb   : > { %p535_p1 = scmp.lt.s32.totalorder %s746_s3, %s533_s16  ;;  %p536_p2 = scmp.lt.s32.totalorder %s534_s19, %s528_s7 }
  0xbc   : > { %p531_p0 = pneg %p530_p12 }
  0xbd   : > { %p537_p3 = por %p536_p2, %p535_p1 }
  0xbf   : > { %p538_p5 = pnand %p537_p3, %p531_p0 }
  0xc1   : > { %541 = shalt.err (!%p538_p5)
}
  0xc2   : > { %s542_s29 = scalar_lea.hbm %s744_s12, 256  ;;  %s546_s15 = scalar_lea.hbm %s815_s2, 512 }
  0xc3   : > { %p543_p6 = scmp.ne.s32.totalorder %s744_s12, %s542_s29  ;;  %p547_p4 = scmp.lt.s32.totalorder %s744_s12, %s815_s2 }
  0xc4   : > { %p548_p13 = scmp.lt.s32.totalorder %s546_s15, %s542_s29 }
  0xc5   : > { %p544_p7 = pnand %p543_p6, %p685_p9 }
  0xc6   : > { %p549_p8 = por %p548_p13, %p547_p4 }
  0xc7   : > { %p545_p10 = pneg %p544_p7 }
  0xc9   : > { %p550_p11 = pnand %p549_p8, %p545_p10 }
  0xcb   : > { %553 = shalt.err (!%p550_p11)
}
  0xcc   : > { %407 = dma.vmem_to_hbm [thread:$0]  (%p685_p9), %s746_s3, 256, %s744_s12, %s243_s5  }
  0xcd PF: > { %s283_s26 = sand.u32 1, %s592_s9   ;;  %p821_p12 = scmp.ne.s32.totalorder %s819_s24, 0 }
  0xce   : > { %p822_p0 = scmp.ge.s32.totalorder %s612_s14, 2  ;;  %s284_s27 = scalar_lea.sflag [#allocation4], %s283_s26 }
  0xd0   : > { %p415_p1 = pnand %p822_p0, %p821_p12 }
  0xd2   : > { %p416_p2 = pneg %p415_p1 }
  0xd4   : > { %583 = dma.done.wait (%p416_p2), %s284_s27, 256  }
  0xd5   : > { %585 = vsyncadd (%p416_p2), %s284_s27, 4294967040  ;;  %s293_s21 = scalar_lea.sflag [#allocation7], %s283_s26 }
  0xd6   : > { %587 = dma.done.wait (%p416_p2), %s293_s21, 256  }
  0xd7   : > { %589 = vsyncadd (%p416_p2), %s293_s21, 4294967040  ;;  %s22_s14 = sadd.s32 1, %s612_s14   ;;  %s823_s9 = smov %s596_s10 }
  0xd8   : > { %p19_p3 = scmp.ge.s32.totalorder %s22_s14, 4   ;;  %s824_s10 = smov %s600_s11 }
  0xd9   : > { %s825_s11 = smov %s690_s23  ;;  %s826_s12 = smov %s608_s13 }
  0xda   : > { %s827_s13 = smov %s829_s17  ;;  %21 = sbr.rel (!%p19_p3) target bundleno = 8 (0x8), region = 90 }
  0xdf   :  { %298 = vsyncpa [#allocation3], 1 }
  0xe0   :  { %300 = vsyncpa [#allocation3 + $0x1], 1 }
  0xe1   :  { %301 = vsyncpa [#allocation4], 1 }
  0xe2   :  { %303 = vsyncpa [#allocation4 + $0x1], 1 }
  0xe3   :  { %304 = vsyncpa [#allocation7], 1 }
  0xe4   :  { %306 = vsyncpa [#allocation7 + $0x1], 1 }

</bundles_post_ra>
